<compile_context>
chip_gen: v7x
topology: tpu7x:2x2x1
jax: 0.10.0
libtpu: 0.0.40
codegen_flags: <defaults>
</compile_context>

<pallas_src>
import functools

import jax
import jax.numpy as jnp
from jax import lax
from jax.experimental import pallas as pl
from jax.experimental.pallas import tpu as pltpu


ACT_DTYPE = jnp.bfloat16     # activations / MXU inputs
PARAM_DTYPE = jnp.bfloat16   # matmul weights
LN_EPS = 1e-5
LANE = 128
SUBLANE = 8


def _pick_tile(dim, target, align):
    """Largest tile <= target that divides dim and is a multiple of `align`;
    otherwise the full dim (full-extent blocks are always legal)."""
    if dim <= target or dim % align != 0:
        return dim
    t = (target // align) * align
    while t >= align:
        if dim % t == 0:
            return t
        t -= align
    return dim


# ----------------------------------------------------------------------------
# Kernel 1: patch embedding (patchify-matmul + bias + pos-embed), grid over B
# ----------------------------------------------------------------------------

def _patch_embed_kernel(xp_ref, w_ref, b_ref, pos_ref, o_ref):
    x = xp_ref[0]                                           # (N, C*P*P) bf16
    y = jnp.dot(x, w_ref[...], preferred_element_type=jnp.float32)
    y = y + b_ref[...] + pos_ref[...]                       # bias + pos, f32
    o_ref[0] = y.astype(o_ref.dtype)


def patch_embed(xp, w, b, pos):
    B, N, K = xp.shape
    D = w.shape[1]
    return pl.pallas_call(
        _patch_embed_kernel,
        out_shape=jax.ShapeDtypeStruct((B, N, D), ACT_DTYPE),
        grid=(B,),
        in_specs=[
            pl.BlockSpec((1, N, K), lambda b_: (b_, 0, 0)),
            pl.BlockSpec((K, D), lambda b_: (0, 0)),
            pl.BlockSpec((1, D), lambda b_: (0, 0)),
            pl.BlockSpec((N, D), lambda b_: (0, 0)),
        ],
        out_specs=pl.BlockSpec((1, N, D), lambda b_: (b_, 0, 0)),
        compiler_params=pltpu.CompilerParams(dimension_semantics=("parallel",)),
    )(xp, w, b.reshape(1, D), pos)


# ----------------------------------------------------------------------------
# Kernel 2: fused attention sub-block (LN1 + QKV + MHA + proj + residual)
# grid over batch; full sequence per step (fits VMEM for ViT-scale N, D)
# ----------------------------------------------------------------------------

def _attn_block_kernel(x_ref, g_ref, bt_ref, qkvw_ref, qkvb_ref,
                       pw_ref, pb_ref, o_ref, *, num_heads):
    x = x_ref[0].astype(jnp.float32)                        # (N, D)
    D = x.shape[-1]
    dh = D // num_heads
    scale = 1.0 / float(dh) ** 0.5

    # LayerNorm in f32, fused into the QKV matmul.
    mu = jnp.mean(x, axis=-1, keepdims=True)
    var = jnp.mean(jnp.square(x - mu), axis=-1, keepdims=True)
    h = (x - mu) * lax.rsqrt(var + LN_EPS)
    h = h * g_ref[...] + bt_ref[...]

    # One lane-dense (N, 3D) matmul with bf16 MXU inputs, f32 accumulation.
    qkv = jnp.dot(h.astype(qkvw_ref.dtype), qkvw_ref[...],
                  preferred_element_type=jnp.float32)
    qkv = (qkv + qkvb_ref[...]).astype(qkvw_ref.dtype)

    # Residual + output-projection bias folded into the accumulator.
    y = x + pb_ref[...]
    for hd in range(num_heads):                             # static unroll
        lo = hd * dh
        qh = qkv[:, lo:lo + dh]
        kh = qkv[:, D + lo:D + lo + dh]
        vh = qkv[:, 2 * D + lo:2 * D + lo + dh]
        # q·k^T via dot_general contracting last dims (no explicit transpose).
        s = lax.dot_general(qh, kh, (((1,), (1,)), ((), ())),
                            preferred_element_type=jnp.float32) * scale
        s = s - jnp.max(s, axis=-1, keepdims=True)
        p = jnp.exp(s)
        p = p * pl.reciprocal(jnp.sum(p, axis=-1, keepdims=True), approx=True)
        ctx = jnp.dot(p.astype(vh.dtype), vh,
                      preferred_element_type=jnp.float32)   # (N, dh)
        # Fold this head's slice of the output projection (head merge for free).
        y = y + jnp.dot(ctx.astype(pw_ref.dtype), pw_ref[lo:lo + dh, :],
                        preferred_element_type=jnp.float32)
    o_ref[0] = y.astype(o_ref.dtype)


def attn_block(x, p, num_heads):
    B, N, D = x.shape
    return pl.pallas_call(
        functools.partial(_attn_block_kernel, num_heads=num_heads),
        out_shape=jax.ShapeDtypeStruct((B, N, D), ACT_DTYPE),
        grid=(B,),
        in_specs=[
            pl.BlockSpec((1, N, D), lambda b_: (b_, 0, 0)),
            pl.BlockSpec((1, D), lambda b_: (0, 0)),
            pl.BlockSpec((1, D), lambda b_: (0, 0)),
            pl.BlockSpec((D, 3 * D), lambda b_: (0, 0)),
            pl.BlockSpec((1, 3 * D), lambda b_: (0, 0)),
            pl.BlockSpec((D, D), lambda b_: (0, 0)),
            pl.BlockSpec((1, D), lambda b_: (0, 0)),
        ],
        out_specs=pl.BlockSpec((1, N, D), lambda b_: (b_, 0, 0)),
        compiler_params=pltpu.CompilerParams(dimension_semantics=("parallel",)),
    )(x, p["ln1_g"].reshape(1, D), p["ln1_b"].reshape(1, D),
      p["qkv_w"], p["qkv_b"].reshape(1, 3 * D),
      p["proj_w"], p["proj_b"].reshape(1, D))


# ----------------------------------------------------------------------------
# Kernel 3: fused MLP sub-block (LN2 + fc1 + GELU + fc2 + residual)
# grid = (token tiles [parallel], hidden tiles [arbitrary]) with f32 accumulator
# ----------------------------------------------------------------------------

def _mlp_block_kernel(x_ref, g_ref, bt_ref, w1_ref, b1_ref, w2_ref, b2_ref,
                      o_ref, acc_ref):
    f = pl.program_id(1)
    x = x_ref[...].astype(jnp.float32)                      # (tm, D)

    @pl.when(f == 0)
    def _():
        # Residual + fc2 bias folded into the accumulator init.
        acc_ref[...] = x + b2_ref[...]

    mu = jnp.mean(x, axis=-1, keepdims=True)
    var = jnp.mean(jnp.square(x - mu), axis=-1, keepdims=True)
    h = (x - mu) * lax.rsqrt(var + LN_EPS)
    h = h * g_ref[...] + bt_ref[...]

    t = jnp.dot(h.astype(w1_ref.dtype), w1_ref[...],
                preferred_element_type=jnp.float32) + b1_ref[...]
    # TODO(synk): PyTorch nn.GELU default is the exact erf form; tanh approx
    # is used here for reliable Mosaic lowering (small numerical difference).
    t = jax.nn.gelu(t, approximate=True)                    # f32 elementwise
    acc_ref[...] += jnp.dot(t.astype(w2_ref.dtype), w2_ref[...],
                            preferred_element_type=jnp.float32)

    @pl.when(f == pl.num_programs(1) - 1)
    def _():
        o_ref[...] = acc_ref[...].astype(o_ref.dtype)


def mlp_block(x2, p):
    M, D = x2.shape
    F = p["fc1_w"].shape[1]
    tm = _pick_tile(M, 256, SUBLANE)     # modest tiles -> fits v7x 64 MiB VMEM
    tf = _pick_tile(F, 512, LANE)
    return pl.pallas_call(
        _mlp_block_kernel,
        out_shape=jax.ShapeDtypeStruct((M, D), ACT_DTYPE),
        grid=(M // tm, F // tf),
        in_specs=[
            pl.BlockSpec((tm, D), lambda i, f: (i, 0)),
            pl.BlockSpec((1, D), lambda i, f: (0, 0)),
            pl.BlockSpec((1, D), lambda i, f: (0, 0)),
            pl.BlockSpec((D, tf), lambda i, f: (0, f)),
            pl.BlockSpec((1, tf), lambda i, f: (0, f)),
            pl.BlockSpec((tf, D), lambda i, f: (f, 0)),
            pl.BlockSpec((1, D), lambda i, f: (0, 0)),
        ],
        out_specs=pl.BlockSpec((tm, D), lambda i, f: (i, 0)),
        scratch_shapes=[pltpu.VMEM((tm, D), jnp.float32)],
        compiler_params=pltpu.CompilerParams(
            dimension_semantics=("parallel", "arbitrary")),
    )(x2, p["ln2_g"].reshape(1, D), p["ln2_b"].reshape(1, D),
      p["fc1_w"], p["fc1_b"].reshape(1, F),
      p["fc2_w"], p["fc2_b"].reshape(1, D))


# ----------------------------------------------------------------------------
# Kernel 4: final LayerNorm + head Linear (lane-padded output)
# ----------------------------------------------------------------------------

def _head_kernel(x_ref, g_ref, bt_ref, w_ref, hb_ref, o_ref):
    x = x_ref[...].astype(jnp.float32)
    mu = jnp.mean(x, axis=-1, keepdims=True)
    var = jnp.mean(jnp.square(x - mu), axis=-1, keepdims=True)
    h = (x - mu) * lax.rsqrt(var + LN_EPS)
    h = h * g_ref[...] + bt_ref[...]
    y = jnp.dot(h.astype(w_ref.dtype), w_ref[...],
                preferred_element_type=jnp.float32) + hb_ref[...]
    o_ref[...] = y.astype(o_ref.dtype)


def final_ln_head(x2, g, b, w_pad, b_pad):
    M, D = x2.shape
    Hp = w_pad.shape[1]
    tm = _pick_tile(M, 512, SUBLANE)
    return pl.pallas_call(
        _head_kernel,
        out_shape=jax.ShapeDtypeStruct((M, Hp), jnp.float32),
        grid=(M // tm,),
        in_specs=[
            pl.BlockSpec((tm, D), lambda i: (i, 0)),
            pl.BlockSpec((1, D), lambda i: (0, 0)),
            pl.BlockSpec((1, D), lambda i: (0, 0)),
            pl.BlockSpec((D, Hp), lambda i: (0, 0)),
            pl.BlockSpec((1, Hp), lambda i: (0, 0)),
        ],
        out_specs=pl.BlockSpec((tm, Hp), lambda i: (i, 0)),
        compiler_params=pltpu.CompilerParams(dimension_semantics=("parallel",)),
    )(x2, g.reshape(1, D), b.reshape(1, D), w_pad, b_pad.reshape(1, Hp))


# ----------------------------------------------------------------------------
# Parameters & forward glue
# ----------------------------------------------------------------------------

def init_params(key, *, in_chans, patch, embed_dim, depth, num_heads, mlp_dim,
                head_dim, num_patches):
    def nrm(k, shape, scale=0.02):
        return scale * jax.random.normal(k, shape, dtype=jnp.float32)

    keys = jax.random.split(key, 4 + depth)
    head_pad = max(LANE, ((head_dim + LANE - 1) // LANE) * LANE)
    head_w = nrm(keys[2], (embed_dim, head_dim))
    head_w_pad = jnp.zeros((embed_dim, head_pad), jnp.float32)
    head_w_pad = head_w_pad.at[:, :head_dim].set(head_w).astype(PARAM_DTYPE)

    params = {
        "patch_w": nrm(keys[0], (in_chans * patch * patch, embed_dim)).astype(PARAM_DTYPE),
        "patch_b": jnp.zeros((embed_dim,), jnp.float32),
        "pos_embed": nrm(keys[1], (num_patches, embed_dim)),
        "final_ln_g": jnp.ones((embed_dim,), jnp.float32),
        "final_ln_b": jnp.zeros((embed_dim,), jnp.float32),
        "head_w_pad": head_w_pad,
        "head_b_pad": jnp.zeros((head_pad,), jnp.float32),
        "blocks": [],
    }
    for d in range(depth):
        bk = jax.random.split(keys[4 + d], 4)
        params["blocks"].append({
            "ln1_g": jnp.ones((embed_dim,), jnp.float32),
            "ln1_b": jnp.zeros((embed_dim,), jnp.float32),
            "qkv_w": nrm(bk[0], (embed_dim, 3 * embed_dim)).astype(PARAM_DTYPE),
            "qkv_b": jnp.zeros((3 * embed_dim,), jnp.float32),
            "proj_w": nrm(bk[1], (embed_dim, embed_dim)).astype(PARAM_DTYPE),
            "proj_b": jnp.zeros((embed_dim,), jnp.float32),
            "ln2_g": jnp.ones((embed_dim,), jnp.float32),
            "ln2_b": jnp.zeros((embed_dim,), jnp.float32),
            "fc1_w": nrm(bk[2], (embed_dim, mlp_dim)).astype(PARAM_DTYPE),
            "fc1_b": jnp.zeros((mlp_dim,), jnp.float32),
            "fc2_w": nrm(bk[3], (mlp_dim, embed_dim)).astype(PARAM_DTYPE),
            "fc2_b": jnp.zeros((embed_dim,), jnp.float32),
        })
    cfg = {"patch": patch, "embed_dim": embed_dim, "num_heads": num_heads,
           "head_dim": head_dim}
    return params, cfg


def target_encoder_forward(params, cfg, signal, target_mask,
                           num_targets=4, num_splits=1):
    """Mirrors TargetEncoder.forward: returns head(transformer(signal_embed(x)))."""
    # TODO(synk): torch.chunk(target_mask)/extract_valid_region outputs are dead
    # code in the reference forward (it returns `x`); the Transformer's use of
    # target_mask is undefined in the snippet, so the mask is not applied.
    del target_mask, num_targets, num_splits

    B, C, H, W = signal.shape
    P = cfg["patch"]
    D = cfg["embed_dim"]
    N = (H // P) * (W // P)

    # signal_embed: patchify (Conv2d kernel=stride=P) -> fused matmul+bias+pos
    xp = signal.astype(ACT_DTYPE).reshape(B, C, H // P, P, W // P, P)
    xp = jnp.transpose(xp, (0, 2, 4, 1, 3, 5)).reshape(B, N, C * P * P)
    x = patch_embed(xp, params["patch_w"], params["patch_b"], params["pos_embed"])

    # transformer: 2 fused kernels per block
    for blk in params["blocks"]:
        x = attn_block(x, blk, cfg["num_heads"])
        x = mlp_block(x.reshape(B * N, D), blk).reshape(B, N, D)

    # final LN + head (lane-padded output, sliced back to head_dim)
    y = final_ln_head(x.reshape(B * N, D), params["final_ln_g"],
                      params["final_ln_b"], params["head_w_pad"],
                      params["head_b_pad"])
    return y[:, :cfg["head_dim"]].reshape(B, N, cfg["head_dim"])


# ----------------------------------------------------------------------------
# Main
# ----------------------------------------------------------------------------

if __name__ == "__main__":
    B, C, H, W = 2, 4, 16, 16
    patch = 4
    embed_dim = 32
    depth = 2
    num_heads = 2
    mlp_dim = 64
    head_dim = 8
    num_targets = 4
    num_patches = (H // patch) * (W // patch)   # 16 tokens/image

    key = jax.random.PRNGKey(0)
    k_params, k_signal, k_mask = jax.random.split(key, 3)

    params, cfg = init_params(
        k_params, in_chans=C, patch=patch, embed_dim=embed_dim, depth=depth,
        num_heads=num_heads, mlp_dim=mlp_dim, head_dim=head_dim,
        num_patches=num_patches)

    signal = jax.random.normal(k_signal, (B, C, H, W), dtype=jnp.float32)
    target_mask = jax.random.bernoulli(
        k_mask, p=0.5, shape=(num_targets * B, num_patches))

    out = target_encoder_forward(params, cfg, signal, target_mask,
                                 num_targets=num_targets, num_splits=1)
    out = jax.block_until_ready(out)

    assert out.shape == (B, num_patches, head_dim), out.shape
    assert jnp.all(jnp.isfinite(out))
    print("KERNEL_OK")
</pallas_src>

<mosaic_0001>
module attributes {stable_mosaic.version = 11 : i64} {
  func.func @_patch_embed_kernel(%arg0: i32, %arg1: memref<1x16x64xbf16, #tpu.memory_space<vmem>>, %arg2: memref<64x32xbf16, #tpu.memory_space<vmem>>, %arg3: memref<1x32xf32, #tpu.memory_space<vmem>>, %arg4: memref<16x32xf32, #tpu.memory_space<vmem>>, %arg5: memref<1x16x32xbf16, #tpu.memory_space<vmem>>) attributes {dimension_semantics = [#tpu.dimension_semantics<parallel>], iteration_bounds = array<i64: 2>, scalar_prefetch = 0 : i64, scratch_operands = 0 : i64, tpu.core_type = #tpu.core_type<tc>, window_params = [{transform_indices = @transform_0, window_bounds = array<i64: 1, 16, 64>}, {pipeline_mode = #tpu.pipeline_mode<synchronous>, transform_indices = @transform_1, window_bounds = array<i64: 64, 32>}, {pipeline_mode = #tpu.pipeline_mode<synchronous>, transform_indices = @transform_2, window_bounds = array<i64: 1, 32>}, {pipeline_mode = #tpu.pipeline_mode<synchronous>, transform_indices = @transform_3, window_bounds = array<i64: 16, 32>}, {transform_indices = @transform_4, window_bounds = array<i64: 1, 16, 32>}]} {
    %c0 = arith.constant 0 : index
    %c0_0 = arith.constant 0 : index
    %c0_1 = arith.constant 0 : index
    %0 = vector.load %arg1[%c0, %c0_0, %c0_1] : memref<1x16x64xbf16, #tpu.memory_space<vmem>>, vector<1x16x64xbf16>
    %1 = vector.shape_cast %0 : vector<1x16x64xbf16> to vector<16x64xbf16>
    %c0_2 = arith.constant 0 : index
    %c0_3 = arith.constant 0 : index
    %2 = vector.load %arg2[%c0_2, %c0_3] : memref<64x32xbf16, #tpu.memory_space<vmem>>, vector<64x32xbf16>
    %cst = arith.constant dense<0.000000e+00> : vector<16x32xf32>
    %3 = tpu.matmul %1, %2, %cst {dimension_numbers = #tpu.dot_dimension_numbers<[1], [0], [0], [1], [0, 0, 1, 1], [], []>} : vector<16x64xbf16>, vector<64x32xbf16>, vector<16x32xf32> -> vector<16x32xf32>
    %c0_4 = arith.constant 0 : index
    %c0_5 = arith.constant 0 : index
    %4 = vector.load %arg3[%c0_4, %c0_5] : memref<1x32xf32, #tpu.memory_space<vmem>>, vector<1x32xf32>
    %5 = vector.broadcast %4 : vector<1x32xf32> to vector<16x32xf32>
    %6 = arith.addf %3, %5 : vector<16x32xf32>
    %c0_6 = arith.constant 0 : index
    %c0_7 = arith.constant 0 : index
    %7 = vector.load %arg4[%c0_6, %c0_7] : memref<16x32xf32, #tpu.memory_space<vmem>>, vector<16x32xf32>
    %8 = arith.addf %6, %7 : vector<16x32xf32>
    %9 = arith.truncf %8 : vector<16x32xf32> to vector<16x32xbf16>
    %c0_8 = arith.constant 0 : index
    %c0_9 = arith.constant 0 : index
    %c0_10 = arith.constant 0 : index
    %10 = vector.load %arg5[%c0_8, %c0_9, %c0_10] : memref<1x16x32xbf16, #tpu.memory_space<vmem>>, vector<1x16x32xbf16>
    %11 = vector.shape_cast %10 : vector<1x16x32xbf16> to vector<16x32xbf16>
    %12 = vector.shape_cast %9 : vector<16x32xbf16> to vector<1x16x32xbf16>
    tpu.vector_store %arg5[%c0_8, %c0_9, %c0_10], %12 {strides = array<i32>} : memref<1x16x32xbf16, #tpu.memory_space<vmem>>, vector<1x16x32xbf16>,
    return
  }
  func.func @transform_0(%arg0: i32) -> (i32, i32, i32) {
    %c0_i32 = arith.constant 0 : i32
    %c0_i32_0 = arith.constant 0 : i32
    %c0_i32_1 = arith.constant 0 : i32
    return %arg0, %c0_i32, %c0_i32_0 : i32, i32, i32
  }
  func.func @transform_1(%arg0: i32) -> (i32, i32) {
    %c0_i32 = arith.constant 0 : i32
    %c0_i32_0 = arith.constant 0 : i32
    %c0_i32_1 = arith.constant 0 : i32
    return %c0_i32, %c0_i32_0 : i32, i32
  }
  func.func @transform_2(%arg0: i32) -> (i32, i32) {
    %c0_i32 = arith.constant 0 : i32
    %c0_i32_0 = arith.constant 0 : i32
    %c0_i32_1 = arith.constant 0 : i32
    return %c0_i32, %c0_i32_0 : i32, i32
  }
  func.func @transform_3(%arg0: i32) -> (i32, i32) {
    %c0_i32 = arith.constant 0 : i32
    %c0_i32_0 = arith.constant 0 : i32
    %c0_i32_1 = arith.constant 0 : i32
    return %c0_i32, %c0_i32_0 : i32, i32
  }
  func.func @transform_4(%arg0: i32) -> (i32, i32, i32) {
    %c0_i32 = arith.constant 0 : i32
    %c0_i32_0 = arith.constant 0 : i32
    %c0_i32_1 = arith.constant 0 : i32
    return %arg0, %c0_i32, %c0_i32_0 : i32, i32, i32
  }
}

</mosaic_0001>

<bundles_post_ra>
// kernel: tpu_custom_call.1
= control target key start
LH: loop header
LB: loop body
LE: loop exit
PB: predicated region body
PF: predicated region fallthrough
CT: control target
= control target key end

     0   :  { %9 = vsyncpa [#allocation3], 0  ;;  %s687_s0 = inlined_call_operand.vmem [shape: bf16[2,16,64], index: 0, kind: input, shape index: {}]   ;;  %s688_s1 = inlined_call_operand.vmem [shape: bf16[64,32], index: 1, kind: input, shape index: {}]   ;;  %s689_s2 = inlined_call_operand.vmem [shape: f32[1,32], index: 2, kind: input, shape index: {}]   ;;  %s690_s3 = inlined_call_operand.vmem [shape: f32[16,32], index: 3, kind: input, shape index: {}]   ;;  %s691_s4 = inlined_call_operand.hbm [shape: bf16[2,16,32], index: 4, kind: output, shape index: {}]  }
   0x1   :  { %11 = vsyncpa [#allocation3 + $0x1], 0  ;;  %s563_s15 = smov 0   ;;  %s565_s16 = smov 0  }
   0x2   :  { %s567_s17 = smov 0   ;;  %s569_s18 = smov 0  }
   0x3 LB: > { %s584_s19 = sadd.s32 4294967295, %s531_s18   ;;  %s379_s20 = sadd.s32 4294967294, %s531_s18   ;;  %s531_s18 = sphi %s569_s18, %s697_s18   ;;  %s527_s17 = sphi %s567_s17, %s696_s17   ;;  %s523_s16 = sphi %s565_s16, %s695_s16   ;;  %s519_s15 = sphi %s563_s15, %s694_s15  }
   0x4   : > { %s588_s21 = sadd.s32 1, %s531_s18   ;;  %s113_s22 = sadd.s32 1, %s527_s17 }
   0x5   : > { %s110_s23 = ssub.s32 %s531_s18, %s588_s21  ;;  %p123_p0 = scmp.ne.s32.totalorder %s527_s17, %s523_s16 }
   0x6   : > { %p111_p1 = scmp.eq.s32.totalorder %s110_s23, 0  ;;  %p124_p2 = scmp.eq.s32.totalorder %s584_s19, 1 }
   0x7   : > { %p129_p3 = scmp.ne.s32.totalorder %s523_s16, %s519_s15  ;;  %p130_p4 = scmp.eq.s32.totalorder %s379_s20, 1 }
   0x8   : > { %s599_s24 = scalar_select %p111_p1, %s527_s17, %s113_s22  }
   0x9   : > { %p601_p5 = por %p124_p2, %p123_p0  ;;  %p605_p6 = por %p130_p4, %p129_p3 }
   0xa   : > { %p382_p7 = scmp.ge.s32.totalorder %s531_s18, 1  ;;  %p165_p8 = scmp.lt.s32.totalorder %s531_s18, 3 }
   0xc   : > { %p166_p9 = pnand %p382_p7, %p165_p8 }
   0xd   : > { %v464_v0 = vld [vmem:[%s688_s1] sm:$0xff] (!%p166_p9)   ;;  %v533_v1 = vmov (!%p166_p9), 0.0   ;;  %v465_v2 = vld [vmem:[%s688_s1 + $0x8] sm:$0xff] (!%p166_p9)   ;;  %vm534_vm0 = vmmov (!%p166_p9), 0   ;;  %p191_p10 = scmp.lt.s32.totalorder (!%p166_p9), %s584_s19, 1  ;;  %v466_v3 = vld [vmem:[%s688_s1 + $0x10] sm:$0xff] (!%p166_p9)  }
   0xe   : > { %169 = sbr.rel (%p166_p9) target bundleno = 265 (0x109), region = 36  ;;  %409 = vmatprep.subr.bf16.mxu0 (!%p166_p9), %v533_v1  ;;  %417 = vmatprep.mubr.msk.bf16.mxu0 (!%p166_p9), %vm534_vm0, %v533_v1  ;;  %v467_v4 = vld [vmem:[%s688_s1 + $0x18] sm:$0xff] (!%p166_p9)   ;;  %vm243_vm1 = vcmask (!%p166_p9), 523264   ;;  %s188_s14 = sand.u32 (!%p166_p9), 1, %s523_s16   ;;  %v386_v6 = vld [vmem:[%s689_s2] ss:$0 sm:$0xff] (!%p166_p9) }
   0xf   : > { %410 = vmatpush3.bf16.msra.mxu0 (!%p166_p9), %v464_v0  ;;  %s383_s20 = sshll.u32 (!%p166_p9), %s188_s14, 3  ;;  %v288_v8 = vld [vmem:[%s690_s3] sm:$0xff] (!%p166_p9)  ;;  %v289_v12 = vld [vmem:[%s690_s3 + $0x8] sm:$0xff] (!%p166_p9)  ;;  %vm300_vm2 = vcmask (!%p166_p9), 257024   ;;  %s535_s12 = smov (!%p166_p9), [#allocation2]  }
  0x10   : > { %411 = vmatprep.subr.bf16.mxu0 (!%p166_p9), %v533_v1  ;;  %s190_s6 = scalar_lea.vmem (!%p166_p9), [#allocation2], %s383_s20  ;;  %s473_s13 = sshll.u32 (!%p166_p9), %s535_s12, 4  ;;  %s474_s13 = int_to_ptr.vmem [resolvable:$false] %s473_s13 }
  0x11   : > { %s317_s7 = sshll.u32 (!%p166_p9), %s190_s6, 4  ;;  %s475_s20 = scalar_lea.vmem (!%p166_p9), %s474_s13, 256  ;;  %s644_s7 = int_to_ptr.vmem [resolvable:$true] %s317_s7 }
  0x12   : > { %p476_p0 = scmp.lt.s32.totalorder (!%p166_p9), %s644_s7, %s474_s13 }
  0x13   : > { %412 = vmatpush3.bf16.msra.mxu0 (!%p166_p9), %v465_v2 }
  0x14   : > { %413 = vmatprep.subr.bf16.mxu0 (!%p166_p9), %v533_v1 }
  0x15   : > { %s192_s5 = scalar_select %p191_p10, %s584_s19, 1 }
  0x17   : > { %s400_s8 = sshll.u32 %s192_s5, 3  ;;  %414 = vmatpush3.bf16.msra.mxu0 %v466_v3  ;;  %s403_s5 = sshll.u32 %s584_s19, 7 }
  0x18   : > { %s195_s11 = scalar_lea.vmem %s687_s0, %s400_s8  ;;  %415 = vmatprep.subr.bf16.mxu0 %v533_v1  ;;  %s642_s10 = scalar_lea.hbm %s691_s4, %s403_s5 }
  0x19   : > { %v468_v5 = vld [vmem:[%s195_s11] sm:$0xff]   ;;  %s646_s11 = scalar_lea.sflag [#allocation3], %s188_s14  ;;  %s469_s19 = scalar_lea.vmem %s644_s7, 128 }
  0x1a   : > { %p470_p11 = scmp.ne.s32.totalorder %s644_s7, %s469_s19  ;;  %p477_p1 = scmp.lt.s32.totalorder %s475_s20, %s469_s19 }
  0x1b   : > { %416 = vmatpush3.bf16.msra.mxu0 %v467_v4 }
  0x1c   : > { %p471_p12 = pnand %p470_p11, %p601_p5  ;;  %p478_p2 = por %p477_p1, %p476_p0 }
  0x1e   : > { %418 = vmatmul.mubr.msk.bf16.vlgmr.msra.gmra.mrb[0].mxu0 %vm243_vm1, %v468_v5  ;;  %p472_p13 = pneg %p471_p12 }
  0x20   : > { %p479_p3 = pnand %p478_p2, %p472_p13 }
  0xf1   : > { %v281_v7 = vpop.f32.mrb[0].mxu0 }
  0xf2   : > { %v282_v9 = vadd.f32 %v386_v6, %v281_v7  ;;  %v419_v10 = vpop.f32.mrb[1].mxu0 }
  0xf3   : > { %v284_v11 = vpop.f32.mrb[2].mxu0 }
  0xf4   : > { %v290_v13 = vadd.f32 %v288_v8, %v282_v9  ;;  %v285_v14 = vadd.f32 %v386_v6, %v284_v11  ;;  %v420_v15 = vpop.f32.mrb[3].mxu0 }
  0xf6   : > { %v401_v16 = vpack.c.bf16 %v290_v13, %v290_v13  ;;  %v291_v17 = vadd.f32 %v289_v12, %v285_v14 }
  0xf8   : > { %301 = vst.msk [vmem:[%s190_s6] sm:$0xf] %vm300_vm2, %v401_v16  ;;  %v402_v18 = vpack.c.bf16 %v291_v17, %v291_v17 }
  0xfa   : > { %302 = vst.msk [vmem:[%s190_s6 + $0x4] sm:$0xf] %vm300_vm2, %v402_v18 }
  0xfb   : > { %482 = shalt.err (!%p479_p3)
}
  0xfc   : > { %s483_s14 = scalar_lea.hbm %s642_s10, 128  ;;  %s487_s27 = scalar_lea.hbm %s691_s4, 256 }
  0xfd   : > { %p484_p4 = scmp.ne.s32.totalorder %s642_s10, %s483_s14  ;;  %p488_p9 = scmp.lt.u32.totalorder %s642_s10, %s691_s4 }
  0xfe   : > { %p489_p10 = scmp.lt.u32.totalorder %s487_s27, %s483_s14  ;;  %p491_p12 = scmp.lt.u32.totalorder %s483_s14, %s642_s10 }
  0xff   : > { %p485_p7 = pnand %p484_p4, %p601_p5 }
 0x100   : > { %p490_p11 = por %p489_p10, %p488_p9 }
 0x101   : > { %p486_p8 = pneg %p485_p7 }
 0x102   : > { %p492_p13 = por %p491_p12, %p490_p11 }
 0x104   : > { %p493_p0 = pnand %p492_p13, %p486_p8 }
 0x106   : > { %496 = shalt.err (!%p493_p0)
}
 0x107   : > { %s536_s30 = smov 64   ;;  %s537_s5 = smov 4  }
 0x108   : > { %421 = dma.vmem_to_hbm [thread:$0]  (%p601_p5), %s644_s7, 128, %s642_s10, %s646_s11, %s536_s30, %s536_s30, %s537_s5  }
 0x109 PF: > { %p427_p1 = scmp.ge.s32.totalorder %s531_s18, 2  ;;  %s332_s6 = sand.u32 1, %s519_s15  }
 0x10a   : > { %s333_s8 = scalar_lea.sflag [#allocation3], %s332_s6 }
 0x10b   : > { %p424_p2 = pnand %p427_p1, %p605_p6 }
 0x10d   : > { %514 = dma.done.wait (!%p424_p2), %s333_s8, 128  }
 0x10e   : > { %516 = vsyncadd (!%p424_p2), %s333_s8, 4294967168  ;;  %p14_p3 = scmp.ge.s32.totalorder %s588_s21, 4   ;;  %s694_s15 = smov %s523_s16 }
 0x10f   : > { %s695_s16 = smov %s527_s17  ;;  %s696_s17 = smov %s599_s24 }
 0x110   : > { %s697_s18 = smov %s588_s21  ;;  %16 = sbr.rel (!%p14_p3) target bundleno = 3 (0x3), region = 71 }
 0x117   :  { %338 = vsyncpa [#allocation3], 1 }
 0x118   :  { %340 = vsyncpa [#allocation3 + $0x1], 1 }

</bundles_post_ra>
